<compile_context>
chip_gen: v7x
topology: tpu7x:2x2x1
jax: 0.10.0
libtpu: 0.0.40
codegen_flags: <defaults>
</compile_context>

<pallas_src>
import functools

import jax
import jax.numpy as jnp
import numpy as np
from jax.experimental import pallas as pl
from jax.experimental.pallas import tpu as pltpu


def _round_up(a, b):
    return (a + b - 1) // b * b


def _pool_conv_bn_relu_kernel(x_ref, w_ref, b_ref, y_ref, acc_ref, *, inv_hw):
    # x_ref:   (1, Cin, TILE_HW)  flattened-spatial tile, HW on lanes (dense)
    # w_ref:   (Cout, Cin)        conv 1x1 weight with BN scale folded in
    # b_ref:   (Cout, 1)          folded BN bias
    # y_ref:   (1, Cout, 1)       pooled -> conv -> bn -> relu result
    # acc_ref: (Cin, 1) f32       running spatial sum (persists across tiles)
    t = pl.program_id(1)

    @pl.when(t == 0)
    def _init():
        acc_ref[...] = jnp.zeros_like(acc_ref)

    # Partial spatial sum for this tile (f32 accumulation, lane reduction).
    acc_ref[...] += jnp.sum(
        x_ref[0].astype(jnp.float32), axis=-1, keepdims=True)

    @pl.when(t == pl.num_programs(1) - 1)
    def _finalize():
        mean = acc_ref[...] * inv_hw                              # (Cin, 1)
        y = jnp.dot(w_ref[...], mean,
                    preferred_element_type=jnp.float32)           # (Cout, 1)
        y = jnp.maximum(y + b_ref[...], 0.0)                      # BN + ReLU
        y_ref[0] = y.astype(y_ref.dtype)


def _broadcast_kernel(y_ref, o_ref):
    # y_ref: (1, Cout, 1);  o_ref: (1, Cout, TILE_HW)  (lane-dense store)
    o_ref[...] = jnp.broadcast_to(y_ref[...], o_ref.shape).astype(o_ref.dtype)


def image_pool_forward(x_nchw, conv_w, bn_gamma, bn_beta, bn_mean, bn_var,
                       *, eps=1e-5, tile_hw=None):
    """x_nchw: (N, Cin, H, W); conv_w: (Cout, Cin, 1, 1); BN params: (Cout,)."""
    N, Cin, H, W = x_nchw.shape
    Cout = conv_w.shape[0]
    HW = H * W

    # Fold bias-free 1x1 conv + eval-mode BatchNorm into one affine map.
    scale = bn_gamma / jnp.sqrt(bn_var + eps)                           # (Cout,)
    w_eff = (conv_w[:, :, 0, 0] * scale[:, None]).astype(jnp.float32)  # (Cout, Cin)
    b_eff = (bn_beta - bn_mean * scale).astype(jnp.float32)[:, None]   # (Cout, 1)

    # Lane-aligned spatial tile: keep a block to ~4 MiB so double-buffered
    # input stays well inside scoped VMEM on v5e/v6e/v7x.
    if tile_hw is None:
        itemsize = np.dtype(x_nchw.dtype).itemsize
        budget = 4 * 1024 * 1024
        max_tile = max(128, (budget // max(1, Cin * itemsize)) // 128 * 128)
        tile_hw = min(_round_up(HW, 128), max_tile)
    hw_pad = _round_up(HW, tile_hw)
    num_tiles = hw_pad // tile_hw

    x_flat = x_nchw.reshape(N, Cin, HW)
    if hw_pad != HW:
        # Zero padding does not perturb the spatial sum; divisor stays H*W.
        x_flat = jnp.pad(x_flat, ((0, 0), (0, 0), (0, hw_pad - HW)))

    # Phase 1: global average pool + folded conv/BN/ReLU  ->  (N, Cout, 1).
    pool_kernel = functools.partial(_pool_conv_bn_relu_kernel, inv_hw=1.0 / HW)
    y = pl.pallas_call(
        pool_kernel,
        out_shape=jax.ShapeDtypeStruct((N, Cout, 1), jnp.float32),
        grid=(N, num_tiles),
        in_specs=[
            pl.BlockSpec((1, Cin, tile_hw), lambda n, t: (n, 0, t)),
            pl.BlockSpec((Cout, Cin), lambda n, t: (0, 0)),
            pl.BlockSpec((Cout, 1), lambda n, t: (0, 0)),
        ],
        out_specs=pl.BlockSpec((1, Cout, 1), lambda n, t: (n, 0, 0)),
        scratch_shapes=[pltpu.VMEM((Cin, 1), jnp.float32)],
        compiler_params=pltpu.CompilerParams(
            dimension_semantics=("parallel", "arbitrary")),
    )(x_flat, w_eff, b_eff)

    # Phase 2: broadcast the per-image vector over lane-dense spatial tiles.
    out_flat = pl.pallas_call(
        _broadcast_kernel,
        out_shape=jax.ShapeDtypeStruct((N, Cout, hw_pad), x_nchw.dtype),
        grid=(N, num_tiles),
        in_specs=[pl.BlockSpec((1, Cout, 1), lambda n, t: (n, 0, 0))],
        out_specs=pl.BlockSpec((1, Cout, tile_hw), lambda n, t: (n, 0, t)),
        compiler_params=pltpu.CompilerParams(
            dimension_semantics=("parallel", "parallel")),
    )(y)

    if hw_pad != HW:
        out_flat = out_flat[:, :, :HW]
    return out_flat.reshape(N, Cout, H, W)


def image_pool_reference(x, conv_w, bn_gamma, bn_beta, bn_mean, bn_var, eps=1e-5):
    """Pure-JAX mirror of the PyTorch module (eval-mode BN)."""
    N, Cin, H, W = x.shape
    Cout = conv_w.shape[0]
    pooled = jnp.mean(x.astype(jnp.float32), axis=(2, 3))            # (N, Cin)
    h = pooled @ conv_w[:, :, 0, 0].T                                # (N, Cout)
    h = (h - bn_mean) / jnp.sqrt(bn_var + eps) * bn_gamma + bn_beta
    h = jnp.maximum(h, 0.0)
    # Bilinear upsampling of a 1x1 map (align_corners=False) is a constant fill.
    return jnp.broadcast_to(h[:, :, None, None], (N, Cout, H, W)).astype(x.dtype)


if __name__ == "__main__":
    # Small shapes consistent with _ImagePool(in_ch=4, out_ch=8).
    N, Cin, H, W = 2, 4, 16, 16
    Cout = 8

    key = jax.random.PRNGKey(0)
    kx, kw, kg, kb, km, kv = jax.random.split(key, 6)
    x = jax.random.normal(kx, (N, Cin, H, W), dtype=jnp.float32)
    conv_w = 0.1 * jax.random.normal(kw, (Cout, Cin, 1, 1), dtype=jnp.float32)
    bn_gamma = 1.0 + 0.1 * jax.random.normal(kg, (Cout,), dtype=jnp.float32)
    bn_beta = 0.1 * jax.random.normal(kb, (Cout,), dtype=jnp.float32)
    bn_mean = 0.05 * jax.random.normal(km, (Cout,), dtype=jnp.float32)
    bn_var = jnp.abs(1.0 + 0.1 * jax.random.normal(kv, (Cout,), dtype=jnp.float32))

    out = jax.block_until_ready(
        image_pool_forward(x, conv_w, bn_gamma, bn_beta, bn_mean, bn_var))
    ref = jax.block_until_ready(
        image_pool_reference(x, conv_w, bn_gamma, bn_beta, bn_mean, bn_var))

    assert out.shape == (N, Cout, H, W), out.shape
    np.testing.assert_allclose(np.asarray(out), np.asarray(ref),
                               rtol=1e-4, atol=1e-5)
    print("KERNEL_OK")
</pallas_src>

<mosaic_0001>
module attributes {stable_mosaic.version = 11 : i64} {
  func.func @_pool_conv_bn_relu_kernel(%arg0: i32, %arg1: i32, %arg2: memref<1x4x256xf32, #tpu.memory_space<vmem>>, %arg3: memref<8x4xf32, #tpu.memory_space<vmem>>, %arg4: memref<8x1xf32, #tpu.memory_space<vmem>>, %arg5: memref<1x8x1xf32, #tpu.memory_space<vmem>>, %arg6: memref<4x1xf32, #tpu.memory_space<vmem>>) attributes {dimension_semantics = [#tpu.dimension_semantics<parallel>, #tpu.dimension_semantics<arbitrary>], iteration_bounds = array<i64: 2, 1>, scalar_prefetch = 0 : i64, scratch_operands = 1 : i64, tpu.core_type = #tpu.core_type<tc>, window_params = [{transform_indices = @transform_0, window_bounds = array<i64: 1, 4, 256>}, {pipeline_mode = #tpu.pipeline_mode<synchronous>, transform_indices = @transform_1, window_bounds = array<i64: 8, 4>}, {pipeline_mode = #tpu.pipeline_mode<synchronous>, transform_indices = @transform_2, window_bounds = array<i64: 8, 1>}, {transform_indices = @transform_3, window_bounds = array<i64: 1, 8, 1>}]} {
    %c0_i32 = arith.constant 0 : i32
    %0 = arith.cmpi eq, %arg1, %c0_i32 : i32
    %1 = arith.extui %0 : i1 to i32
    %c0_i32_0 = arith.constant 0 : i32
    %2 = arith.cmpi ne, %1, %c0_i32_0 : i32
    scf.if %2 {
      %cst_9 = arith.constant 0.000000e+00 : f32
      %13 = vector.broadcast %cst_9 : f32 to vector<4x1xf32>
      %c0_10 = arith.constant 0 : index
      %c0_11 = arith.constant 0 : index
      %14 = vector.load %arg6[%c0_10, %c0_11] : memref<4x1xf32, #tpu.memory_space<vmem>>, vector<4x1xf32>
      tpu.vector_store %arg6[%c0_10, %c0_11], %13 {strides = array<i32>} : memref<4x1xf32, #tpu.memory_space<vmem>>, vector<4x1xf32>,
    } else {
    }
    %c0 = arith.constant 0 : index
    %c0_1 = arith.constant 0 : index
    %3 = vector.load %arg6[%c0, %c0_1] : memref<4x1xf32, #tpu.memory_space<vmem>>, vector<4x1xf32>
    %c0_2 = arith.constant 0 : index
    %c0_3 = arith.constant 0 : index
    %c0_4 = arith.constant 0 : index
    %4 = vector.load %arg2[%c0_2, %c0_3, %c0_4] : memref<1x4x256xf32, #tpu.memory_space<vmem>>, vector<1x4x256xf32>
    %5 = vector.shape_cast %4 : vector<1x4x256xf32> to vector<4x256xf32>
    %cst = arith.constant dense<0.000000e+00> : vector<4xf32>
    %6 = vector.multi_reduction <add>, %5, %cst [1] : vector<4x256xf32> to vector<4xf32>
    %7 = vector.shape_cast %6 : vector<4xf32> to vector<4x1xf32>
    %8 = arith.addf %3, %7 : vector<4x1xf32>
    %c0_5 = arith.constant 0 : index
    %c0_6 = arith.constant 0 : index
    %9 = vector.load %arg6[%c0_5, %c0_6] : memref<4x1xf32, #tpu.memory_space<vmem>>, vector<4x1xf32>
    tpu.vector_store %arg6[%c0_5, %c0_6], %8 {strides = array<i32>} : memref<4x1xf32, #tpu.memory_space<vmem>>, vector<4x1xf32>,
    %c0_i32_7 = arith.constant 0 : i32
    %10 = arith.cmpi eq, %arg1, %c0_i32_7 : i32
    %11 = arith.extui %10 : i1 to i32
    %c0_i32_8 = arith.constant 0 : i32
    %12 = arith.cmpi ne, %11, %c0_i32_8 : i32
    scf.if %12 {
      %c0_9 = arith.constant 0 : index
      %c0_10 = arith.constant 0 : index
      %13 = vector.load %arg6[%c0_9, %c0_10] : memref<4x1xf32, #tpu.memory_space<vmem>>, vector<4x1xf32>
      %cst_11 = arith.constant 3.906250e-03 : f32
      %14 = vector.broadcast %cst_11 : f32 to vector<4x1xf32>
      %15 = arith.mulf %13, %14 : vector<4x1xf32>
      %c0_12 = arith.constant 0 : index
      %c0_13 = arith.constant 0 : index
      %16 = vector.load %arg3[%c0_12, %c0_13] : memref<8x4xf32, #tpu.memory_space<vmem>>, vector<8x4xf32>
      %cst_14 = arith.constant dense<0.000000e+00> : vector<8x1xf32>
      %17 = tpu.matmul %16, %15, %cst_14 {dimension_numbers = #tpu.dot_dimension_numbers<[1], [0], [0], [1], [0, 0, 1, 1], [], []>} : vector<8x4xf32>, vector<4x1xf32>, vector<8x1xf32> -> vector<8x1xf32>
      %c0_15 = arith.constant 0 : index
      %c0_16 = arith.constant 0 : index
      %18 = vector.load %arg4[%c0_15, %c0_16] : memref<8x1xf32, #tpu.memory_space<vmem>>, vector<8x1xf32>
      %19 = arith.addf %17, %18 : vector<8x1xf32>
      %cst_17 = arith.constant 0.000000e+00 : f32
      %20 = vector.broadcast %cst_17 : f32 to vector<8x1xf32>
      %21 = arith.maximumf %19, %20 : vector<8x1xf32>
      %c0_18 = arith.constant 0 : index
      %c0_19 = arith.constant 0 : index
      %c0_20 = arith.constant 0 : index
      %22 = vector.load %arg5[%c0_18, %c0_19, %c0_20] : memref<1x8x1xf32, #tpu.memory_space<vmem>>, vector<1x8x1xf32>
      %23 = vector.shape_cast %22 : vector<1x8x1xf32> to vector<8x1xf32>
      %24 = vector.shape_cast %21 : vector<8x1xf32> to vector<1x8x1xf32>
      tpu.vector_store %arg5[%c0_18, %c0_19, %c0_20], %24 {strides = array<i32>} : memref<1x8x1xf32, #tpu.memory_space<vmem>>, vector<1x8x1xf32>,
    } else {
    }
    return
  }
  func.func @transform_0(%arg0: i32, %arg1: i32) -> (i32, i32, i32) {
    %c0_i32 = arith.constant 0 : i32
    %c0_i32_0 = arith.constant 0 : i32
    return %arg0, %c0_i32, %arg1 : i32, i32, i32
  }
  func.func @transform_1(%arg0: i32, %arg1: i32) -> (i32, i32) {
    %c0_i32 = arith.constant 0 : i32
    %c0_i32_0 = arith.constant 0 : i32
    %c0_i32_1 = arith.constant 0 : i32
    return %c0_i32, %c0_i32_0 : i32, i32
  }
  func.func @transform_2(%arg0: i32, %arg1: i32) -> (i32, i32) {
    %c0_i32 = arith.constant 0 : i32
    %c0_i32_0 = arith.constant 0 : i32
    %c0_i32_1 = arith.constant 0 : i32
    return %c0_i32, %c0_i32_0 : i32, i32
  }
  func.func @transform_3(%arg0: i32, %arg1: i32) -> (i32, i32, i32) {
    %c0_i32 = arith.constant 0 : i32
    %c0_i32_0 = arith.constant 0 : i32
    %c0_i32_1 = arith.constant 0 : i32
    return %arg0, %c0_i32, %c0_i32_0 : i32, i32, i32
  }
}

</mosaic_0001>

<bundles_post_ra>
// kernel: tpu_custom_call.1
= control target key start
LH: loop header
LB: loop body
LE: loop exit
PB: predicated region body
PF: predicated region fallthrough
CT: control target
= control target key end

     0   :  { %s464_s12 = smov 0   ;;  %s466_s13 = smov 0   ;;  %s508_s0 = inlined_call_operand.vmem [shape: f32[2,4,256], index: 0, kind: input, shape index: {}]   ;;  %s509_s1 = inlined_call_operand.vmem [shape: f32[8,4], index: 1, kind: input, shape index: {}]   ;;  %s510_s2 = inlined_call_operand.vmem [shape: f32[8,1], index: 2, kind: input, shape index: {}]   ;;  %s511_s3 = inlined_call_operand.vmem [shape: f32[2,8,1], index: 3, kind: output, shape index: {}]  }
   0x1   :  { %s468_s14 = smov 0  }
   0x2 LB: > { %s25_s15 = sadd.s32 1, %s436_s13  ;;  %p375_p0 = scmp.ge.s32.totalorder %s440_s14, 1  ;;  %s440_s14 = sphi %s468_s14, %s13_s14   ;;  %s436_s13 = sphi %s466_s13, %s513_s13   ;;  %s432_s12 = sphi %s464_s12, %s512_s12  }
   0x3   : > { %p27_p1 = scmp.ge.s32.totalorder %s25_s15, 2  ;;  %p156_p2 = scmp.lt.s32.totalorder %s440_s14, 3 }
   0x5   : > { %s515_s15 = smov (%p27_p1, %s25_s15), 0  ;;  %p157_p3 = pnand %p375_p0, %p156_p2 }
   0x6   : > { %p184_p4 = scmp.lt.s32.totalorder (!%p157_p3), %s432_s12, 1  ;;  %vm201_vm0 = vcmask (!%p157_p3), 3072   ;;  %v442_v0 = vmov (!%p157_p3), 0.0   ;;  %vm208_vm1 = vcmask (!%p157_p3), 1043456   ;;  %vm443_vm2 = vmmov (!%p157_p3), 0   ;;  %v222_v11 = vld [vmem:[%s509_s1] sm:$0xff] (!%p157_p3) }
   0x7   : > { %160 = sbr.rel (%p157_p3) target bundleno = 395 (0x18b), region = 32  ;;  %202 = vst.msk [vmem:[#allocation2] sm:$0xf] (!%p157_p3), %vm201_vm0, %v442_v0  ;;  %386 = vmatprep.subr.mxu0 (!%p157_p3), %v442_v0  ;;  %388 = vmatprep.mubr.msk.f32.mxu0 (!%p157_p3), %vm443_vm2, %v442_v0  ;;  %vm224_vm3 = vcmask (!%p157_p3), 31744   ;;  %v223_v12 = vld [vmem:[%s510_s2] sm:$0xff] (!%p157_p3)  ;;  %vm302_vm4 = vcmask (!%p157_p3), 7168  }
   0xe   : > { %s517_s12 = smov (!%p184_p4, %s432_s12), 1  ;;  %v203_v6 = vld [vmem:[#allocation2] sm:$0xf] }
   0xf   : > { %s383_s16 = sshll.u32 %s517_s12, 3 }
  0x10   : > { %s191_s19 = scalar_lea.vmem %s508_s0, %s383_s16  ;;  %s196_s26 = scalar_lea.vmem %s511_s3, %s383_s16 }
  0x11   : > { %v204_v1 = vld [vmem:[%s191_s19] sm:$0xff] }
  0x12   : > { %v206_v2 = vcombine.high %v204_v1, %v204_v1  ;;  %v209_v3 = vsel %vm208_vm1, %v204_v1, 0.0 }
  0x14   : > { %v210_v4 = vsel %vm208_vm1, %v206_v2, 0.0 }
  0x15   : > { %v211_v5 = vadd.f32 %v210_v4, %v209_v3 }
  0x17   : > { %212 = vadd.xlane.f32.xlu0 %v211_v5 }
  0xa4   : > { %v213_v7 = vpop.xlane.xlu0 %212 }
  0xa5   : > { %v214_v8 = vadd.f32 %v213_v7, %v203_v6 }
  0xa7   : > { %216 = vst.msk [vmem:[#allocation2] sm:$0xf] %vm201_vm0, %v214_v8 }
  0xae   : > { %v220_v9 = vld [vmem:[#allocation2] sm:$0xf] }
  0xaf   : > { %v221_v10 = vmul.f32 0.00390625, %v220_v9 }
  0xb1   : > { %387 = vmatpush3.msk.msra.mxu0 %vm208_vm1, %v221_v10 }
  0xb2   : > { %389 = vmatmul.mubr.msk.f32.vlgmr.msra.gmra.mrb[0].mxu0 %vm224_vm3, %v222_v11 }
 0x185   : > { %v297_v13 = vpop.f32.mrb[0].mxu0 }
 0x186   : > { %v298_v14 = vadd.f32 %v297_v13, %v223_v12  ;;  %v390_v15 = vpop.f32.mrb[1].mxu0 }
 0x188   : > { %v301_v16 = vmax.f32 %v298_v14, 0.0 }
 0x18a   : > { %303 = vst.msk [vmem:[%s196_s26] sm:$0xff] %vm302_vm4, %v301_v16 }
 0x18b PF: > { %s13_s14 = sadd.s32 1, %s440_s14   ;;  %s512_s12 = smov %s436_s13 }
 0x18c   : > { %p10_p5 = scmp.ge.s32.totalorder %s13_s14, 4   ;;  %s513_s13 = smov %s515_s15 }
 0x18e   :  { %12 = sbr.rel (!%p10_p5) target bundleno = 2 (0x2), region = 70 }

</bundles_post_ra>
